<compile_context>
chip_gen: v7x
topology: tpu7x:2x2x1
jax: 0.10.0
libtpu: 0.0.40
codegen_flags: <defaults>
</compile_context>

<pallas_src>
import jax
import jax.numpy as jnp
from jax.experimental import pallas as pl
from jax.experimental.pallas import tpu as pltpu


_VMEM_SPEC = pl.BlockSpec(memory_space=pltpu.MemorySpace.VMEM)


# ----------------------------------------------------------------------------
# Stage 1: batched meta-net (Linear -> ReLU -> Linear [+ dom]) + ctx shift.
# Batch-tiled grid; weights / biases / ctx are whole-array VMEM residents.
# ----------------------------------------------------------------------------
def _meta_core(x, w1, b1, w2, b2):
    h = jnp.dot(x, w1, preferred_element_type=jnp.float32) + b1
    h = jnp.maximum(h, 0.0)
    h = h.astype(w2.dtype)          # native-precision second matmul (fp16 CLIP)
    return jnp.dot(h, w2, preferred_element_type=jnp.float32) + b2


def _meta_net_kernel(x_ref, w1_ref, b1_ref, w2_ref, b2_ref, ctx_ref, out_ref):
    # x: (tb, vis_dim), ctx: (n_ctx, ctx_dim), out: (tb, n_ctx, ctx_dim) out_dtype
    bias = _meta_core(x_ref[...], w1_ref[...], b1_ref[...], w2_ref[...], b2_ref[...])
    ctx = ctx_ref[...].astype(jnp.float32)
    out_ref[...] = (ctx[None, :, :] + bias[:, None, :]).astype(out_ref.dtype)


def _meta_net_dom_kernel(x_ref, dom_ref, w1_ref, b1_ref, w2_ref, b2_ref, ctx_ref,
                         out_ref):
    bias = _meta_core(x_ref[...], w1_ref[...], b1_ref[...], w2_ref[...], b2_ref[...])
    bias = bias + dom_ref[...]                          # dom already f32 (tb, ctx_dim)
    ctx = ctx_ref[...].astype(jnp.float32)
    out_ref[...] = (ctx[None, :, :] + bias[:, None, :]).astype(out_ref.dtype)


# ----------------------------------------------------------------------------
# Stage 2: prompt assembly.  grid = (class-tiles, batch); batch innermost so
# prefix/suffix blocks are not re-fetched across the batch loop.
# ----------------------------------------------------------------------------
def _assemble_kernel(ctx_all_ref, prefix_ref, suffix_ref, out_ref):
    # ctx_all_ref: (B, n_ctx, ctx_dim)  whole array, VMEM resident, out_dtype
    # prefix_ref:  (tn_cls, 1, ctx_dim)
    # suffix_ref:  (tn_cls, n_suffix, ctx_dim)
    # out_ref:     (1, tn_cls, seq_len, ctx_dim)
    b = pl.program_id(1)                         # batch is the inner grid axis
    n_ctx = ctx_all_ref.shape[1]
    tn_cls, _, ctx_dim = prefix_ref.shape

    ctx_b = ctx_all_ref[b]                       # (n_ctx, ctx_dim), out_dtype

    # merged head: prefix row + broadcast context rows, one store for [0, 1+n_ctx)
    head = jnp.concatenate(
        [prefix_ref[...],
         jnp.broadcast_to(ctx_b[None, :, :], (tn_cls, n_ctx, ctx_dim))],
        axis=1)                                  # (tn_cls, 1 + n_ctx, ctx_dim)
    out_ref[0, :, :1 + n_ctx, :] = head

    # suffix rows (remaining seq positions), direct store, no cast
    out_ref[0, :, 1 + n_ctx:, :] = suffix_ref[...]


# ----------------------------------------------------------------------------
# Wrapper
# ----------------------------------------------------------------------------
def _pick_class_tile(n_cls, seq_len, n_suffix, ctx_dim, itemsize, budget_bytes,
                     class_block=None):
    """Largest class tile whose double-buffered blocks fit the VMEM budget.

    Ragged last tile is allowed (grid uses cdiv), so no divisibility constraint.
    """
    per_cls = 2 * ctx_dim * itemsize * (seq_len + 1 + n_suffix)   # out + prefix + suffix
    cap = max(1, int(budget_bytes // max(per_cls, 1)))
    if class_block is not None:
        cap = min(cap, int(class_block))
    return max(1, min(n_cls, cap))


def prompt_learner_forward(im_features, params, dom=None, *, class_block=None,
                           vmem_budget_bytes=12 * 1024 * 1024, batch_block=256):
    """im_features: (B, vis_dim). Returns prompts: (B, n_cls, seq_len, ctx_dim)."""
    w1, b1, w2, b2 = params["w1"], params["b1"], params["w2"], params["b2"]
    ctx, prefix, suffix = params["ctx"], params["token_prefix"], params["token_suffix"]

    B, vis_dim = im_features.shape
    hidden = w1.shape[1]
    n_ctx, ctx_dim = ctx.shape
    n_cls, pref_w, _ = prefix.shape
    assert pref_w == 1, "token_prefix must have a single SOS token per class"
    n_suffix = suffix.shape[1]
    seq_len = 1 + n_ctx + n_suffix
    out_dtype = prefix.dtype                      # prompt/token-embedding dtype
    out_isz = jnp.dtype(out_dtype).itemsize

    # Frozen embeddings must already be in the prompt dtype (no in-kernel cast).
    prefix = prefix.astype(out_dtype)
    suffix = suffix.astype(out_dtype)

    # --- stage 1: batch-tiled meta-net + ctx shift; output in out_dtype -------
    b1_2 = b1.reshape(1, hidden).astype(jnp.float32)
    b2_2 = b2.reshape(1, ctx_dim).astype(jnp.float32)

    if B <= batch_block:
        tb = B
    else:
        tb = max(8, (batch_block // 8) * 8)       # keep sublane alignment when tiled
    nb = pl.cdiv(B, tb)

    x_spec = pl.BlockSpec((tb, vis_dim), lambda i: (i, 0))
    meta_out_spec = pl.BlockSpec((tb, n_ctx, ctx_dim), lambda i: (i, 0, 0))

    if dom is None:
        meta_kernel = _meta_net_kernel
        meta_args = (im_features, w1, b1_2, w2, b2_2, ctx)
        meta_in_specs = [x_spec] + [_VMEM_SPEC] * 5
    else:
        dom_arr = jnp.asarray(dom, jnp.float32)
        if dom_arr.ndim == 3:                     # (B, 1, ctx_dim) -> (B, ctx_dim)
            dom_arr = dom_arr.reshape(dom_arr.shape[0], dom_arr.shape[-1])
        dom2 = jnp.broadcast_to(dom_arr, (B, ctx_dim))
        meta_kernel = _meta_net_dom_kernel
        meta_args = (im_features, dom2, w1, b1_2, w2, b2_2, ctx)
        meta_in_specs = [x_spec, pl.BlockSpec((tb, ctx_dim), lambda i: (i, 0))] \
                        + [_VMEM_SPEC] * 5

    ctx_shifted = pl.pallas_call(
        meta_kernel,
        out_shape=jax.ShapeDtypeStruct((B, n_ctx, ctx_dim), out_dtype),
        grid_spec=pltpu.PrefetchScalarGridSpec(
            num_scalar_prefetch=0,
            grid=(nb,),
            in_specs=meta_in_specs,
            out_specs=meta_out_spec),
        compiler_params=pltpu.CompilerParams(dimension_semantics=("parallel",)),
    )(*meta_args)

    # --- stage 2: prompt assembly, grid = (class tiles, batch) ---------------
    tn_cls = _pick_class_tile(n_cls, seq_len, n_suffix, ctx_dim, out_isz,
                              vmem_budget_bytes, class_block=class_block)
    n_c_tiles = pl.cdiv(n_cls, tn_cls)

    grid_spec = pltpu.PrefetchScalarGridSpec(
        num_scalar_prefetch=0,
        grid=(n_c_tiles, B),                      # class tiles OUTER, batch INNER
        in_specs=[
            _VMEM_SPEC,                           # ctx_shifted: whole array resident
            pl.BlockSpec((tn_cls, 1, ctx_dim), lambda c, b: (c, 0, 0)),        # prefix
            pl.BlockSpec((tn_cls, n_suffix, ctx_dim), lambda c, b: (c, 0, 0)),  # suffix
        ],
        out_specs=pl.BlockSpec((1, tn_cls, seq_len, ctx_dim),
                               lambda c, b: (b, c, 0, 0)),
    )

    # Explicit scoped-VMEM limit sized from the actual footprint (double-buffered
    # tiles + resident ctx_shifted + headroom), capped well under v7x's 64 MiB.
    tile_bytes = 2 * tn_cls * ctx_dim * out_isz * (seq_len + 1 + n_suffix)
    ctx_res_bytes = B * n_ctx * ctx_dim * out_isz
    vmem_limit = int(min(max(tile_bytes + ctx_res_bytes + (6 << 20), 20 << 20),
                         48 << 20))

    # prefix/suffix are read once (not once per batch element) after the reorder.
    out_bytes = B * n_cls * seq_len * ctx_dim * out_isz
    in_bytes = n_cls * (1 + n_suffix) * ctx_dim * out_isz + ctx_res_bytes
    cost = pl.CostEstimate(flops=0, transcendentals=0,
                           bytes_accessed=int(out_bytes + in_bytes))

    return pl.pallas_call(
        _assemble_kernel,
        out_shape=jax.ShapeDtypeStruct((B, n_cls, seq_len, ctx_dim), out_dtype),
        grid_spec=grid_spec,
        compiler_params=pltpu.CompilerParams(
            dimension_semantics=("parallel", "parallel"),
            vmem_limit_bytes=vmem_limit),
        cost_estimate=cost,
    )(ctx_shifted, prefix, suffix)


# ----------------------------------------------------------------------------
# Pure-JAX reference mirroring the PyTorch forward.
# ----------------------------------------------------------------------------
def _reference_forward(im_features, params, dom=None):
    w1, b1, w2, b2 = params["w1"], params["b1"], params["w2"], params["b2"]
    ctx, prefix, suffix = params["ctx"], params["token_prefix"], params["token_suffix"]
    h = jnp.maximum(im_features @ w1 + b1, 0.0)
    bias = (h @ w2 + b2)[:, None, :]                     # (B, 1, ctx_dim)
    if dom is not None:
        bias = bias + dom
    ctx_shifted = ctx[None] + bias                       # (B, n_ctx, ctx_dim)
    n_cls = prefix.shape[0]
    outs = []
    for i in range(im_features.shape[0]):
        ctx_i = jnp.broadcast_to(ctx_shifted[i][None],
                                 (n_cls,) + ctx_shifted[i].shape)
        outs.append(jnp.concatenate([prefix, ctx_i, suffix], axis=1))
    return jnp.stack(outs)


if __name__ == "__main__":
    # Small shapes consistent with the module:
    #   vis_dim=64 (hidden = vis_dim//16 = 4), ctx_dim=32, n_ctx=4, n_cls=4,
    #   seq_len=16 -> n_suffix = 16 - 1 - n_ctx = 11, batch=2.
    B, vis_dim, ctx_dim = 2, 64, 32
    hidden = vis_dim // 16
    n_ctx, n_cls, seq_len = 4, 4, 16
    n_suffix = seq_len - 1 - n_ctx

    key = jax.random.PRNGKey(0)
    k = jax.random.split(key, 9)
    params = {
        # meta_net.linear1 / linear2 (deterministic synthetic init)
        "w1": jax.random.normal(k[0], (vis_dim, hidden), jnp.float32) * 0.05,
        "b1": jax.random.normal(k[1], (hidden,), jnp.float32) * 0.01,
        "w2": jax.random.normal(k[2], (hidden, ctx_dim), jnp.float32) * 0.05,
        "b2": jax.random.normal(k[3], (ctx_dim,), jnp.float32) * 0.01,
        # ctx vectors: nn.init.normal_(std=0.02)
        "ctx": jax.random.normal(k[4], (n_ctx, ctx_dim), jnp.float32) * 0.02,
        # frozen token embeddings (synthetic stand-ins for CLIP embeddings)
        "token_prefix": jax.random.normal(k[5], (n_cls, 1, ctx_dim), jnp.float32),
        "token_suffix": jax.random.normal(k[6], (n_cls, n_suffix, ctx_dim), jnp.float32),
    }
    im_features = jax.random.normal(k[7], (B, vis_dim), jnp.float32)
    dom = jax.random.normal(k[8], (B, 1, ctx_dim), jnp.float32) * 0.1

    ref = _reference_forward(im_features, params, dom=None)
    ref_d = _reference_forward(im_features, params, dom=dom)

    # dom=None, single class tile (default budget)
    out = prompt_learner_forward(im_features, params, dom=None)
    out = jax.block_until_ready(out)
    assert out.shape == (B, n_cls, seq_len, ctx_dim), out.shape
    assert jnp.allclose(out, ref, atol=1e-5, rtol=1e-5), "mismatch (no dom, 1 tile)"

    # dom=None, ragged class tiling (tn_cls=3 over n_cls=4 -> cdiv grid)
    out_r = prompt_learner_forward(im_features, params, dom=None, class_block=3)
    out_r = jax.block_until_ready(out_r)
    assert jnp.allclose(out_r, ref, atol=1e-5, rtol=1e-5), "mismatch (no dom, ragged)"

    # dom path, even class tiling
    out_d = prompt_learner_forward(im_features, params, dom=dom, class_block=2)
    out_d = jax.block_until_ready(out_d)
    assert jnp.allclose(out_d, ref_d, atol=1e-5, rtol=1e-5), "mismatch (dom)"

    print("KERNEL_OK")
</pallas_src>

<mosaic_0001>
module attributes {stable_mosaic.version = 11 : i64} {
  func.func @_meta_net_kernel(%arg0: i32, %arg1: memref<2x64xf32, #tpu.memory_space<vmem>>, %arg2: memref<64x4xf32, #tpu.memory_space<vmem>>, %arg3: memref<1x4xf32, #tpu.memory_space<vmem>>, %arg4: memref<4x32xf32, #tpu.memory_space<vmem>>, %arg5: memref<1x32xf32, #tpu.memory_space<vmem>>, %arg6: memref<4x32xf32, #tpu.memory_space<vmem>>, %arg7: memref<2x4x32xf32, #tpu.memory_space<vmem>>) attributes {dimension_semantics = [#tpu.dimension_semantics<parallel>], iteration_bounds = array<i64: 1>, scalar_prefetch = 0 : i64, scratch_operands = 0 : i64, tpu.core_type = #tpu.core_type<tc>, window_params = [{transform_indices = @transform_0, window_bounds = array<i64: 2, 64>}, {pipeline_mode = #tpu.pipeline_mode<synchronous>, transform_indices = @transform_1, window_bounds = array<i64: 64, 4>}, {pipeline_mode = #tpu.pipeline_mode<synchronous>, transform_indices = @transform_2, window_bounds = array<i64: 1, 4>}, {pipeline_mode = #tpu.pipeline_mode<synchronous>, transform_indices = @transform_3, window_bounds = array<i64: 4, 32>}, {pipeline_mode = #tpu.pipeline_mode<synchronous>, transform_indices = @transform_4, window_bounds = array<i64: 1, 32>}, {pipeline_mode = #tpu.pipeline_mode<synchronous>, transform_indices = @transform_5, window_bounds = array<i64: 4, 32>}, {transform_indices = @transform_6, window_bounds = array<i64: 2, 4, 32>}]} {
    %c0 = arith.constant 0 : index
    %c0_0 = arith.constant 0 : index
    %0 = vector.load %arg1[%c0, %c0_0] : memref<2x64xf32, #tpu.memory_space<vmem>>, vector<2x64xf32>
    %c0_1 = arith.constant 0 : index
    %c0_2 = arith.constant 0 : index
    %1 = vector.load %arg2[%c0_1, %c0_2] : memref<64x4xf32, #tpu.memory_space<vmem>>, vector<64x4xf32>
    %c0_3 = arith.constant 0 : index
    %c0_4 = arith.constant 0 : index
    %2 = vector.load %arg3[%c0_3, %c0_4] : memref<1x4xf32, #tpu.memory_space<vmem>>, vector<1x4xf32>
    %c0_5 = arith.constant 0 : index
    %c0_6 = arith.constant 0 : index
    %3 = vector.load %arg4[%c0_5, %c0_6] : memref<4x32xf32, #tpu.memory_space<vmem>>, vector<4x32xf32>
    %c0_7 = arith.constant 0 : index
    %c0_8 = arith.constant 0 : index
    %4 = vector.load %arg5[%c0_7, %c0_8] : memref<1x32xf32, #tpu.memory_space<vmem>>, vector<1x32xf32>
    %cst = arith.constant dense<0.000000e+00> : vector<2x4xf32>
    %5 = tpu.matmul %0, %1, %cst {dimension_numbers = #tpu.dot_dimension_numbers<[1], [0], [0], [1], [0, 0, 1, 1], [], []>} : vector<2x64xf32>, vector<64x4xf32>, vector<2x4xf32> -> vector<2x4xf32>
    %6 = vector.broadcast %2 : vector<1x4xf32> to vector<2x4xf32>
    %7 = arith.addf %5, %6 : vector<2x4xf32>
    %cst_9 = arith.constant 0.000000e+00 : f32
    %8 = vector.broadcast %cst_9 : f32 to vector<2x4xf32>
    %9 = arith.maximumf %7, %8 : vector<2x4xf32>
    %cst_10 = arith.constant dense<0.000000e+00> : vector<2x32xf32>
    %10 = tpu.matmul %9, %3, %cst_10 {dimension_numbers = #tpu.dot_dimension_numbers<[1], [0], [0], [1], [0, 0, 1, 1], [], []>} : vector<2x4xf32>, vector<4x32xf32>, vector<2x32xf32> -> vector<2x32xf32>
    %11 = vector.broadcast %4 : vector<1x32xf32> to vector<2x32xf32>
    %12 = arith.addf %10, %11 : vector<2x32xf32>
    %c0_11 = arith.constant 0 : index
    %c0_12 = arith.constant 0 : index
    %13 = vector.load %arg6[%c0_11, %c0_12] : memref<4x32xf32, #tpu.memory_space<vmem>>, vector<4x32xf32>
    %14 = vector.shape_cast %13 : vector<4x32xf32> to vector<1x4x32xf32>
    %15 = vector.shape_cast %12 : vector<2x32xf32> to vector<2x1x32xf32>
    %16 = vector.broadcast %14 : vector<1x4x32xf32> to vector<2x4x32xf32>
    %17 = vector.broadcast %15 : vector<2x1x32xf32> to vector<2x4x32xf32>
    %18 = arith.addf %16, %17 : vector<2x4x32xf32>
    %c0_13 = arith.constant 0 : index
    %c0_14 = arith.constant 0 : index
    %c0_15 = arith.constant 0 : index
    %19 = vector.load %arg7[%c0_13, %c0_14, %c0_15] : memref<2x4x32xf32, #tpu.memory_space<vmem>>, vector<2x4x32xf32>
    tpu.vector_store %arg7[%c0_13, %c0_14, %c0_15], %18 {strides = array<i32>} : memref<2x4x32xf32, #tpu.memory_space<vmem>>, vector<2x4x32xf32>,
    return
  }
  func.func @transform_0(%arg0: i32) -> (i32, i32) {
    %c0_i32 = arith.constant 0 : i32
    %c0_i32_0 = arith.constant 0 : i32
    return %arg0, %c0_i32 : i32, i32
  }
  func.func @transform_1(%arg0: i32) -> (i32, i32) {
    %c0_i32 = arith.constant 0 : i32
    %c0_i32_0 = arith.constant 0 : i32
    %c0_i32_1 = arith.constant 0 : i32
    return %c0_i32, %c0_i32_0 : i32, i32
  }
  func.func @transform_2(%arg0: i32) -> (i32, i32) {
    %c0_i32 = arith.constant 0 : i32
    %c0_i32_0 = arith.constant 0 : i32
    %c0_i32_1 = arith.constant 0 : i32
    return %c0_i32, %c0_i32_0 : i32, i32
  }
  func.func @transform_3(%arg0: i32) -> (i32, i32) {
    %c0_i32 = arith.constant 0 : i32
    %c0_i32_0 = arith.constant 0 : i32
    %c0_i32_1 = arith.constant 0 : i32
    return %c0_i32, %c0_i32_0 : i32, i32
  }
  func.func @transform_4(%arg0: i32) -> (i32, i32) {
    %c0_i32 = arith.constant 0 : i32
    %c0_i32_0 = arith.constant 0 : i32
    %c0_i32_1 = arith.constant 0 : i32
    return %c0_i32, %c0_i32_0 : i32, i32
  }
  func.func @transform_5(%arg0: i32) -> (i32, i32) {
    %c0_i32 = arith.constant 0 : i32
    %c0_i32_0 = arith.constant 0 : i32
    %c0_i32_1 = arith.constant 0 : i32
    return %c0_i32, %c0_i32_0 : i32, i32
  }
  func.func @transform_6(%arg0: i32) -> (i32, i32, i32) {
    %c0_i32 = arith.constant 0 : i32
    %c0_i32_0 = arith.constant 0 : i32
    %c0_i32_1 = arith.constant 0 : i32
    return %arg0, %c0_i32, %c0_i32_0 : i32, i32, i32
  }
}

</mosaic_0001>

<bundles_post_ra>
// kernel: tpu_custom_call.1
= control target key start
LH: loop header
LB: loop body
LE: loop exit
PB: predicated region body
PF: predicated region fallthrough
CT: control target
= control target key end

     0   :  { %v339_v3 = vmov 0.0|0.0   ;;  %vm340_vm0 = vmmov 0   ;;  %v341_v6 = vmov 0.0   ;;  %s432_s0 = inlined_call_operand.vmem [shape: f32[2,64], index: 0, kind: input, shape index: {}]   ;;  %s433_s1 = inlined_call_operand.vmem [shape: f32[64,4], index: 1, kind: input, shape index: {}]   ;;  %s434_s2 = inlined_call_operand.vmem [shape: f32[1,4], index: 2, kind: input, shape index: {}]   ;;  %s435_s3 = inlined_call_operand.vmem [shape: f32[4,32], index: 3, kind: input, shape index: {}]   ;;  %s436_s4 = inlined_call_operand.vmem [shape: f32[1,32], index: 4, kind: input, shape index: {}]   ;;  %s437_s5 = inlined_call_operand.vmem [shape: f32[4,32], index: 5, kind: input, shape index: {}]   ;;  %s438_s6 = inlined_call_operand.hbm [shape: f32[2,4,32], index: 6, kind: output, shape index: {}]  }
   0x1   :  { %v25_v0 = vld [vmem:[%s433_s1] sm:$0xff]  ;;  %v26_v1 = vld [vmem:[%s433_s1 + $0x8] sm:$0xff]  ;;  %v27_v2 = vld [vmem:[%s433_s1 + $0x10] sm:$0xff]  ;;  %296 = vmatprep.subr.bf16.mxu0 %v339_v3  ;;  %288 = vmatprep.mubr.msk.f32.mxu0 %vm340_vm0, %v341_v6 }
   0x2   :  { %v297_v4 = vpack.c.bf16 %v26_v1, %v25_v0  ;;  %v28_v5 = vld [vmem:[%s433_s1 + $0x18] sm:$0xff]  ;;  %291 = vmatprep.subr.mxu1 %v341_v6  ;;  %293 = vmatprep.mubr.msk.f32.mxu1 %vm340_vm0, %v341_v6 }
   0x3   :  { %v300_v7 = vpack.c.bf16 %v28_v5, %v27_v2 }
   0x4   :  { %298 = vmatpush3.bf16.msra.mxu0 %v297_v4 }
   0x5   :  { %11 = vsyncpa [#allocation3], 0  ;;  %299 = vmatprep.subr.bf16.mxu0 %v339_v3  ;;  %v29_v8 = vld [vmem:[%s433_s1 + $0x20] sm:$0xff]  ;;  %v30_v9 = vld [vmem:[%s433_s1 + $0x28] sm:$0xff]  ;;  %vm42_vm1 = vcmask 523264   ;;  %vm127_vm2 = vcmask 1043456   ;;  %v206_v23 = vlaneseq }
   0x6   :  { %v303_v10 = vpack.c.bf16 %v30_v9, %v29_v8  ;;  %v31_v11 = vld [vmem:[%s433_s1 + $0x30] sm:$0xff]  ;;  %v32_v12 = vld [vmem:[%s433_s1 + $0x38] sm:$0xff]  ;;  %v24_v14 = vld [vmem:[%s432_s0] sm:$0x3]  ;;  %vm123_vm3 = vcmask 31744   ;;  %s343_s19 = smov [#allocation2]  }
   0x7   :  { %v306_v13 = vpack.c.bf16 %v32_v12, %v31_v11  ;;  %v34_v15 = vld [vmem:[%s435_s3] sm:$0xf]  ;;  %v342_v21 = vmov 1966171168   ;;  %v207_v25 = vshrl.u32 %v206_v23, 7  ;;  %s245_s20 = sshll.u32 %s343_s19, 4  ;;  %s246_s20 = int_to_ptr.vmem [resolvable:$true] %s245_s20 }
   0x8   :  { %301 = vmatpush3.bf16.msra.mxu0 %v300_v7  ;;  %292 = vmatpush3.msk.msra.mxu1 %vm127_vm2, %v34_v15  ;;  %v256_v16 = vld [vmem:[%s434_s2] ss:$0 sm:$0xff]  ;;  %v204_v22 = vunpack.c.l.s4 %v342_v21  ;;  %vm237_vm4 = vcmask 257024   ;;  %p320_p1 = scmp.lt.s32.totalorder %s246_s20, %s246_s20 }
   0x9   :  { %302 = vmatprep.subr.bf16.mxu0 %v339_v3  ;;  %v258_v26 = vld [vmem:[%s436_s4] ss:$0 sm:$0xff]  ;;  %v227_v32 = vsub.s32 0, %v207_v25  ;;  %s315_s4 = scalar_lea.vmem %s246_s20, 128 }
   0xa   :  { %v205_v24 = vunpack.c.0.s8 %v204_v22  ;;  %v201_v35 = vld [vmem:[%s437_s5] sm:$0xf]  ;;  %p316_p0 = scmp.ne.s32.totalorder %s246_s20, %s315_s4  ;;  %p321_p2 = scmp.lt.s32.totalorder %s315_s4, %s315_s4 }
   0xc   :  { %304 = vmatpush3.bf16.msra.mxu0 %v303_v10  ;;  %v208_v27 = vsub.s32 %v205_v24, %v207_v25  ;;  %p322_p3 = por %p321_p2, %p320_p1 }
   0xd   :  { %305 = vmatprep.subr.bf16.mxu0 %v339_v3 }
   0xe   :  { %p323_p4 = pnand %p322_p3, %p316_p0 }
  0x10   :  { %307 = vmatpush3.bf16.msra.mxu0 %v306_v13 }
  0x13   :  { %289 = vmatmul.mubr.msk.f32.vlgmr.msra.gmra.mrb[0].mxu0 %vm42_vm1, %v24_v14 }
  0xe6   :  { %v112_v17 = vpop.f32.mrb[0].mxu0 }
  0xe7   :  { %v113_v18 = vadd.f32 %v256_v16, %v112_v17  ;;  %v290_v19 = vpop.f32.mrb[1].mxu0 }
  0xe9   :  { %v116_v20 = vmax.f32 %v113_v18, 0.0 }
  0xeb   :  { %294 = vmatmul.mubr.msk.f32.vlgmr.msra.gmra.mrb[0].mxu1 %vm123_vm3, %v116_v20 }
 0x1be   :  { %v197_v28 = vpop.f32.mrb[0].mxu1 }
 0x1bf   :  { %v198_v29 = vadd.f32 %v258_v26, %v197_v28  ;;  %v295_v30 = vpop.f32.mrb[1].mxu1 }
 0x1c1   :  { %v209_v31 = vrot.slane %v198_v29, %v208_v27 }
 0x1c3   :  { %v210_v33 = vcombine.high %v209_v31, %v209_v31  ;;  %v217_v34 = vrot.slane %v209_v31, %v208_v27 }
 0x1c5   :  { %v224_v36 = vrot.slane %v210_v33, %v208_v27  ;;  %v228_v37 = vrot.slane %v217_v34, %v227_v32 }
 0x1c7   :  { %v232_v38 = vrot.slane %v224_v36, %v227_v32  ;;  %v235_v39 = vadd.f32 %v228_v37, %v201_v35 }
 0x1c9   :  { %v236_v40 = vadd.f32 %v232_v38, %v201_v35  ;;  %238 = vst.msk [vmem:[#allocation2] sm:$0xf] %vm237_vm4, %v235_v39 }
 0x1cb   :  { %239 = vst.msk [vmem:[#allocation2 + $0x4] sm:$0xf] %vm237_vm4, %v236_v40 }
 0x1cc   :  { %326 = shalt.err (!%p323_p4)
}
 0x1cd   :  { %s327_s22 = scalar_lea.hbm %s438_s6, 128 }
 0x1ce   :  { %p328_p5 = scmp.ne.s32.totalorder %s438_s6, %s327_s22  ;;  %p331_p6 = scmp.lt.u32.totalorder %s327_s22, %s438_s6 }
 0x1d0   :  { %p333_p7 = pnand %p331_p6, %p328_p5 }
 0x1d2   :  { %336 = shalt.err (!%p333_p7)
}
 0x1d3   :  { %s344_s27 = smov 64   ;;  %s345_s28 = smov 4  }
 0x1d4   :  { %251 = dma.vmem_to_hbm [thread:$0]  %s246_s20, 128, %s438_s6, [#allocation3], %s344_s27, %s344_s27, %s345_s28  }
 0x1d5   :  { %337 = dma.done.wait [#allocation3], 128  }
 0x1d6   :  { %338 = vsyncadd [#allocation3], 4294967168 }
 0x1d7   :  { %255 = vsyncpa [#allocation3], 1 }

</bundles_post_ra>
